<compile_context>
chip_gen: v7x
topology: tpu7x:2x2x1
jax: 0.10.0
libtpu: 0.0.40
codegen_flags: <defaults>
</compile_context>

<pallas_src>
import jax
import jax.numpy as jnp
from jax.experimental import pallas as pl
from jax.experimental.pallas import tpu as pltpu

# Logical (PyTorch) dimensions.
D_IN, D_HID, D_OUT = 200, 300, 30
# Lane-aligned padded dimensions (lane = 128).  D_IN = 200 is already
# 8-aligned and is NOT padded (it only appears as a contraction dim).
P_HID, P_OUT = 384, 128


def _round_up(x, m):
    return (x + m - 1) // m * m


def net200_kernel(x_ref,
                  w1_ref, b1_ref,
                  w2_ref, b2_ref,
                  w3_ref, b3_ref,
                  w4_ref, b4_ref,
                  o_ref):
    # All dots run bf16 on the MXU with f32 accumulation; the bias-add + ReLU
    # epilogue stays in f32.  Activations are cast to bf16 only as MXU inputs.
    x = x_ref[...].astype(jnp.bfloat16)          # in-kernel cast, no wrapper pass

    h = jnp.dot(x, w1_ref[...], preferred_element_type=jnp.float32)  # K = 200
    h = jnp.maximum(h + b1_ref[...], 0.0)

    h = jnp.dot(h.astype(jnp.bfloat16), w2_ref[...],
                preferred_element_type=jnp.float32)
    h = jnp.maximum(h + b2_ref[...], 0.0)

    h = jnp.dot(h.astype(jnp.bfloat16), w3_ref[...],
                preferred_element_type=jnp.float32)
    h = jnp.maximum(h + b3_ref[...], 0.0)

    h = jnp.dot(h.astype(jnp.bfloat16), w4_ref[...],
                preferred_element_type=jnp.float32)
    # Lane-dense (tm, 128) bf16 store; wrapper slices [:, :30] and upcasts.
    o_ref[...] = (h + b4_ref[...]).astype(o_ref.dtype)


def _pad2d(a, rows, cols, dtype):
    out = jnp.zeros((rows, cols), dtype)
    return out.at[:a.shape[0], :a.shape[1]].set(a.astype(dtype))


def prepare_params(params):
    """Pad params to lane-aligned shapes once: weights bf16 (MXU), biases f32."""
    return {
        "w1": _pad2d(params["w1"], D_IN, P_HID, jnp.bfloat16),   # (200, 384)
        "b1": _pad2d(params["b1"], 1, P_HID, jnp.float32),
        "w2": _pad2d(params["w2"], P_HID, P_HID, jnp.bfloat16),  # (384, 384)
        "b2": _pad2d(params["b2"], 1, P_HID, jnp.float32),
        "w3": _pad2d(params["w3"], P_HID, P_HID, jnp.bfloat16),  # (384, 384)
        "b3": _pad2d(params["b3"], 1, P_HID, jnp.float32),
        "w4": _pad2d(params["w4"], P_HID, P_OUT, jnp.bfloat16),  # (384, 128)
        "b4": _pad2d(params["b4"], 1, P_OUT, jnp.float32),
    }


def _choose_batch_tile(B):
    """Batch tile: 16-aligned (bf16 sublane packing), <= 1024 (v7x VMEM),
    ~B/2 so the parallel batch axis gets >= 2 grid steps when B allows it."""
    tm = _round_up(pl.cdiv(B, 2), 16)
    tm = min(tm, 1024, _round_up(B, 8))   # never exceed one (8-aligned) batch
    return max(tm, 8)


@jax.jit
def net200_forward_padded(x, pp):
    """x: (B, 200) f32. pp: prepare_params() output. Returns (B, 30) f32."""
    B = x.shape[0]
    tm = _choose_batch_tile(B)
    grid = (pl.cdiv(B, tm),)               # partial last block handled by Pallas

    def resident(shape):
        # Same block index on every grid step -> stays VMEM-resident.
        return pl.BlockSpec(shape, lambda i: (0, 0))

    out = pl.pallas_call(
        net200_kernel,
        out_shape=jax.ShapeDtypeStruct((B, P_OUT), jnp.bfloat16),
        grid=grid,
        in_specs=[
            # x: full 200-wide rows (last dim == full array dim -> legal).
            pl.BlockSpec((tm, D_IN), lambda i: (i, 0)),
            resident((D_IN, P_HID)), resident((1, P_HID)),
            resident((P_HID, P_HID)), resident((1, P_HID)),
            resident((P_HID, P_HID)), resident((1, P_HID)),
            resident((P_HID, P_OUT)), resident((1, P_OUT)),
        ],
        out_specs=pl.BlockSpec((tm, P_OUT), lambda i: (i, 0)),
        compiler_params=pltpu.CompilerParams(
            dimension_semantics=("parallel",),
        ),
    )(x,
      pp["w1"], pp["b1"], pp["w2"], pp["b2"],
      pp["w3"], pp["b3"], pp["w4"], pp["b4"])

    # Single wrapper op: slice the 30 real logits and upcast bf16 -> f32.
    return out[:, :D_OUT].astype(jnp.float32)


def net200_forward(x, params):
    """Convenience wrapper: pad/cast params then run the kernel."""
    return net200_forward_padded(x, prepare_params(params))


def init_params(key):
    """Deterministic init matching nn.Linear shapes.

    PyTorch nn.Linear(in, out) stores weight (out, in); we store the transpose
    (in, out) so the kernel computes x @ W directly.
    """
    def linear(key, fan_in, fan_out):
        kw, kb = jax.random.split(key)
        bound = 1.0 / (fan_in ** 0.5)  # PyTorch default uniform init bound
        w = jax.random.uniform(kw, (fan_in, fan_out), jnp.float32, -bound, bound)
        b = jax.random.uniform(kb, (1, fan_out), jnp.float32, -bound, bound)
        return w, b

    k1, k2, k3, k4 = jax.random.split(key, 4)
    w1, b1 = linear(k1, D_IN, D_HID)
    w2, b2 = linear(k2, D_HID, D_HID)
    w3, b3 = linear(k3, D_HID, D_HID)
    w4, b4 = linear(k4, D_HID, D_OUT)
    return {"w1": w1, "b1": b1, "w2": w2, "b2": b2,
            "w3": w3, "b3": b3, "w4": w4, "b4": b4}


def net200_ref(x, params, dtype=jnp.float32):
    """Pure-JAX reference (dtype controls matmul input precision)."""
    def lin(h, w, b):
        return jnp.dot(h.astype(dtype), w.astype(dtype),
                       preferred_element_type=jnp.float32) + b

    h = jnp.maximum(lin(x, params["w1"], params["b1"]), 0.0)
    h = jnp.maximum(lin(h, params["w2"], params["b2"]), 0.0)
    h = jnp.maximum(lin(h, params["w3"], params["b3"]), 0.0)
    return lin(h, params["w4"], params["b4"])


if __name__ == "__main__":
    key = jax.random.PRNGKey(0)
    k_params, k_x = jax.random.split(key)

    params = init_params(k_params)
    x = jax.random.normal(k_x, (8, D_IN), jnp.float32)  # batch=8, features=200

    pp = prepare_params(params)          # pad/cast weights once, reuse per call
    out = net200_forward_padded(x, pp)
    out = jax.block_until_ready(out)
    assert out.shape == (8, D_OUT), out.shape

    # Tight check vs a reference that uses the same bf16 matmul inputs
    # (tolerance loosened slightly for the bf16 output store).
    ref_bf16 = net200_ref(x, params, dtype=jnp.bfloat16)
    assert jnp.allclose(out, ref_bf16, atol=2e-2, rtol=2e-2), \
        "mismatch vs bf16 reference"
    # Loose check vs the full-f32 reference (bf16 quantization error budget).
    ref_f32 = net200_ref(x, params, dtype=jnp.float32)
    assert jnp.allclose(out, ref_f32, atol=5e-2, rtol=5e-2), \
        "mismatch vs f32 reference"

    print("KERNEL_OK")
</pallas_src>

<mosaic_0001>
module attributes {stable_mosaic.version = 11 : i64} {
  func.func @net200_kernel(%arg0: i32, %arg1: memref<8x200xf32, #tpu.memory_space<vmem>>, %arg2: memref<200x384xbf16, #tpu.memory_space<vmem>>, %arg3: memref<1x384xf32, #tpu.memory_space<vmem>>, %arg4: memref<384x384xbf16, #tpu.memory_space<vmem>>, %arg5: memref<1x384xf32, #tpu.memory_space<vmem>>, %arg6: memref<384x384xbf16, #tpu.memory_space<vmem>>, %arg7: memref<1x384xf32, #tpu.memory_space<vmem>>, %arg8: memref<384x128xbf16, #tpu.memory_space<vmem>>, %arg9: memref<1x128xf32, #tpu.memory_space<vmem>>, %arg10: memref<8x128xbf16, #tpu.memory_space<vmem>>) attributes {dimension_semantics = [#tpu.dimension_semantics<parallel>], iteration_bounds = array<i64: 1>, scalar_prefetch = 0 : i64, scratch_operands = 0 : i64, tpu.core_type = #tpu.core_type<tc>, window_params = [{transform_indices = @transform_0, window_bounds = array<i64: 8, 200>}, {pipeline_mode = #tpu.pipeline_mode<synchronous>, transform_indices = @transform_1, window_bounds = array<i64: 200, 384>}, {pipeline_mode = #tpu.pipeline_mode<synchronous>, transform_indices = @transform_2, window_bounds = array<i64: 1, 384>}, {pipeline_mode = #tpu.pipeline_mode<synchronous>, transform_indices = @transform_3, window_bounds = array<i64: 384, 384>}, {pipeline_mode = #tpu.pipeline_mode<synchronous>, transform_indices = @transform_4, window_bounds = array<i64: 1, 384>}, {pipeline_mode = #tpu.pipeline_mode<synchronous>, transform_indices = @transform_5, window_bounds = array<i64: 384, 384>}, {pipeline_mode = #tpu.pipeline_mode<synchronous>, transform_indices = @transform_6, window_bounds = array<i64: 1, 384>}, {pipeline_mode = #tpu.pipeline_mode<synchronous>, transform_indices = @transform_7, window_bounds = array<i64: 384, 128>}, {pipeline_mode = #tpu.pipeline_mode<synchronous>, transform_indices = @transform_8, window_bounds = array<i64: 1, 128>}, {transform_indices = @transform_9, window_bounds = array<i64: 8, 128>}]} {
    %c0 = arith.constant 0 : index
    %c0_0 = arith.constant 0 : index
    %0 = vector.load %arg1[%c0, %c0_0] : memref<8x200xf32, #tpu.memory_space<vmem>>, vector<8x200xf32>
    %1 = arith.truncf %0 : vector<8x200xf32> to vector<8x200xbf16>
    %c0_1 = arith.constant 0 : index
    %c0_2 = arith.constant 0 : index
    %2 = vector.load %arg2[%c0_1, %c0_2] : memref<200x384xbf16, #tpu.memory_space<vmem>>, vector<200x384xbf16>
    %cst = arith.constant dense<0.000000e+00> : vector<8x384xf32>
    %3 = tpu.matmul %1, %2, %cst {dimension_numbers = #tpu.dot_dimension_numbers<[1], [0], [0], [1], [0, 0, 1, 1], [], []>} : vector<8x200xbf16>, vector<200x384xbf16>, vector<8x384xf32> -> vector<8x384xf32>
    %c0_3 = arith.constant 0 : index
    %c0_4 = arith.constant 0 : index
    %4 = vector.load %arg3[%c0_3, %c0_4] : memref<1x384xf32, #tpu.memory_space<vmem>>, vector<1x384xf32>
    %5 = vector.broadcast %4 : vector<1x384xf32> to vector<8x384xf32>
    %6 = arith.addf %3, %5 : vector<8x384xf32>
    %cst_5 = arith.constant 0.000000e+00 : f32
    %7 = vector.broadcast %cst_5 : f32 to vector<8x384xf32>
    %8 = arith.maximumf %6, %7 : vector<8x384xf32>
    %9 = arith.truncf %8 : vector<8x384xf32> to vector<8x384xbf16>
    %c0_6 = arith.constant 0 : index
    %c0_7 = arith.constant 0 : index
    %10 = vector.load %arg4[%c0_6, %c0_7] : memref<384x384xbf16, #tpu.memory_space<vmem>>, vector<384x384xbf16>
    %cst_8 = arith.constant dense<0.000000e+00> : vector<8x384xf32>
    %11 = tpu.matmul %9, %10, %cst_8 {dimension_numbers = #tpu.dot_dimension_numbers<[1], [0], [0], [1], [0, 0, 1, 1], [], []>} : vector<8x384xbf16>, vector<384x384xbf16>, vector<8x384xf32> -> vector<8x384xf32>
    %c0_9 = arith.constant 0 : index
    %c0_10 = arith.constant 0 : index
    %12 = vector.load %arg5[%c0_9, %c0_10] : memref<1x384xf32, #tpu.memory_space<vmem>>, vector<1x384xf32>
    %13 = vector.broadcast %12 : vector<1x384xf32> to vector<8x384xf32>
    %14 = arith.addf %11, %13 : vector<8x384xf32>
    %cst_11 = arith.constant 0.000000e+00 : f32
    %15 = vector.broadcast %cst_11 : f32 to vector<8x384xf32>
    %16 = arith.maximumf %14, %15 : vector<8x384xf32>
    %17 = arith.truncf %16 : vector<8x384xf32> to vector<8x384xbf16>
    %c0_12 = arith.constant 0 : index
    %c0_13 = arith.constant 0 : index
    %18 = vector.load %arg6[%c0_12, %c0_13] : memref<384x384xbf16, #tpu.memory_space<vmem>>, vector<384x384xbf16>
    %cst_14 = arith.constant dense<0.000000e+00> : vector<8x384xf32>
    %19 = tpu.matmul %17, %18, %cst_14 {dimension_numbers = #tpu.dot_dimension_numbers<[1], [0], [0], [1], [0, 0, 1, 1], [], []>} : vector<8x384xbf16>, vector<384x384xbf16>, vector<8x384xf32> -> vector<8x384xf32>
    %c0_15 = arith.constant 0 : index
    %c0_16 = arith.constant 0 : index
    %20 = vector.load %arg7[%c0_15, %c0_16] : memref<1x384xf32, #tpu.memory_space<vmem>>, vector<1x384xf32>
    %21 = vector.broadcast %20 : vector<1x384xf32> to vector<8x384xf32>
    %22 = arith.addf %19, %21 : vector<8x384xf32>
    %cst_17 = arith.constant 0.000000e+00 : f32
    %23 = vector.broadcast %cst_17 : f32 to vector<8x384xf32>
    %24 = arith.maximumf %22, %23 : vector<8x384xf32>
    %25 = arith.truncf %24 : vector<8x384xf32> to vector<8x384xbf16>
    %c0_18 = arith.constant 0 : index
    %c0_19 = arith.constant 0 : index
    %26 = vector.load %arg8[%c0_18, %c0_19] : memref<384x128xbf16, #tpu.memory_space<vmem>>, vector<384x128xbf16>
    %cst_20 = arith.constant dense<0.000000e+00> : vector<8x128xf32>
    %27 = tpu.matmul %25, %26, %cst_20 {dimension_numbers = #tpu.dot_dimension_numbers<[1], [0], [0], [1], [0, 0, 1, 1], [], []>} : vector<8x384xbf16>, vector<384x128xbf16>, vector<8x128xf32> -> vector<8x128xf32>
    %c0_21 = arith.constant 0 : index
    %c0_22 = arith.constant 0 : index
    %28 = vector.load %arg9[%c0_21, %c0_22] : memref<1x128xf32, #tpu.memory_space<vmem>>, vector<1x128xf32>
    %29 = vector.broadcast %28 : vector<1x128xf32> to vector<8x128xf32>
    %30 = arith.addf %27, %29 : vector<8x128xf32>
    %31 = arith.truncf %30 : vector<8x128xf32> to vector<8x128xbf16>
    %c0_23 = arith.constant 0 : index
    %c0_24 = arith.constant 0 : index
    %32 = vector.load %arg10[%c0_23, %c0_24] : memref<8x128xbf16, #tpu.memory_space<vmem>>, vector<8x128xbf16>
    tpu.vector_store %arg10[%c0_23, %c0_24], %31 {strides = array<i32>} : memref<8x128xbf16, #tpu.memory_space<vmem>>, vector<8x128xbf16>,
    return
  }
  func.func @transform_0(%arg0: i32) -> (i32, i32) {
    %c0_i32 = arith.constant 0 : i32
    %c0_i32_0 = arith.constant 0 : i32
    return %arg0, %c0_i32 : i32, i32
  }
  func.func @transform_1(%arg0: i32) -> (i32, i32) {
    %c0_i32 = arith.constant 0 : i32
    %c0_i32_0 = arith.constant 0 : i32
    %c0_i32_1 = arith.constant 0 : i32
    return %c0_i32, %c0_i32_0 : i32, i32
  }
  func.func @transform_2(%arg0: i32) -> (i32, i32) {
    %c0_i32 = arith.constant 0 : i32
    %c0_i32_0 = arith.constant 0 : i32
    %c0_i32_1 = arith.constant 0 : i32
    return %c0_i32, %c0_i32_0 : i32, i32
  }
  func.func @transform_3(%arg0: i32) -> (i32, i32) {
    %c0_i32 = arith.constant 0 : i32
    %c0_i32_0 = arith.constant 0 : i32
    %c0_i32_1 = arith.constant 0 : i32
    return %c0_i32, %c0_i32_0 : i32, i32
  }
  func.func @transform_4(%arg0: i32) -> (i32, i32) {
    %c0_i32 = arith.constant 0 : i32
    %c0_i32_0 = arith.constant 0 : i32
    %c0_i32_1 = arith.constant 0 : i32
    return %c0_i32, %c0_i32_0 : i32, i32
  }
  func.func @transform_5(%arg0: i32) -> (i32, i32) {
    %c0_i32 = arith.constant 0 : i32
    %c0_i32_0 = arith.constant 0 : i32
    %c0_i32_1 = arith.constant 0 : i32
    return %c0_i32, %c0_i32_0 : i32, i32
  }
  func.func @transform_6(%arg0: i32) -> (i32, i32) {
    %c0_i32 = arith.constant 0 : i32
    %c0_i32_0 = arith.constant 0 : i32
    %c0_i32_1 = arith.constant 0 : i32
    return %c0_i32, %c0_i32_0 : i32, i32
  }
  func.func @transform_7(%arg0: i32) -> (i32, i32) {
    %c0_i32 = arith.constant 0 : i32
    %c0_i32_0 = arith.constant 0 : i32
    %c0_i32_1 = arith.constant 0 : i32
    return %c0_i32, %c0_i32_0 : i32, i32
  }
  func.func @transform_8(%arg0: i32) -> (i32, i32) {
    %c0_i32 = arith.constant 0 : i32
    %c0_i32_0 = arith.constant 0 : i32
    %c0_i32_1 = arith.constant 0 : i32
    return %c0_i32, %c0_i32_0 : i32, i32
  }
  func.func @transform_9(%arg0: i32) -> (i32, i32) {
    %c0_i32 = arith.constant 0 : i32
    %c0_i32_0 = arith.constant 0 : i32
    return %arg0, %c0_i32 : i32, i32
  }
}

</mosaic_0001>

<bundles_post_ra>
// kernel: net200_forward_padded.1
= control target key start
LH: loop header
LB: loop body
LE: loop exit
PB: predicated region body
PF: predicated region fallthrough
CT: control target
= control target key end

     0   :  { %14 = vsyncpa [#allocation3], 0  ;;  %s3077_s0 = inlined_call_operand.hbm [shape: f32[8,200], index: 0, kind: input, shape index: {}]   ;;  %s3078_s1 = inlined_call_operand.hbm [shape: bf16[200,384], index: 1, kind: input, shape index: {}]   ;;  %s3079_s2 = inlined_call_operand.vmem [shape: f32[1,384], index: 2, kind: input, shape index: {}]   ;;  %s3080_s3 = inlined_call_operand.hbm [shape: bf16[384,384], index: 3, kind: input, shape index: {}]   ;;  %s3081_s4 = inlined_call_operand.vmem [shape: f32[1,384], index: 4, kind: input, shape index: {}]   ;;  %s3082_s5 = inlined_call_operand.hbm [shape: bf16[384,384], index: 5, kind: input, shape index: {}]   ;;  %s3083_s6 = inlined_call_operand.vmem [shape: f32[1,384], index: 6, kind: input, shape index: {}]   ;;  %s3084_s7 = inlined_call_operand.hbm [shape: bf16[384,128], index: 7, kind: input, shape index: {}]   ;;  %s3085_s8 = inlined_call_operand.vmem [shape: f32[1,128], index: 8, kind: input, shape index: {}]   ;;  %s3086_s9 = inlined_call_operand.vmem [shape: bf16[8,128], index: 9, kind: output, shape index: {}]  }
   0x1   :  { %15 = vsyncpa [#allocation5], 0 }
   0x2   :  { %16 = vsyncpa [#allocation8], 0  ;;  %s2860_s30 = smov [#allocation4]   ;;  %s2744_s13 = scalar_lea.hbm %s3078_s1, 4800 }
   0x3   :  { %s32_s10 = sshll.u32 %s2860_s30, 4  ;;  %p2745_p0 = scmp.ne.s32.totalorder %s3078_s1, %s2744_s13  ;;  %s33_s10 = int_to_ptr.vmem [resolvable:$true] %s32_s10 }
   0x4   :  { %p2748_p1 = scmp.lt.u32.totalorder %s2744_s13, %s3078_s1 }
   0x6   :  { %p2750_p2 = pnand %p2748_p1, %p2745_p0 }
   0x8   :  { %2753 = shalt.err (!%p2750_p2)
}
   0x9   :  { %s2754_s18 = scalar_lea.vmem %s33_s10, 4800  ;;  %p2759_p4 = scmp.lt.s32.totalorder %s33_s10, %s33_s10 }
   0xa   :  { %p2755_p3 = scmp.ne.s32.totalorder %s33_s10, %s2754_s18  ;;  %p2760_p5 = scmp.lt.s32.totalorder %s2754_s18, %s2754_s18 }
   0xc   :  { %p2761_p6 = por %p2760_p5, %p2759_p4 }
   0xe   :  { %p2762_p7 = pnand %p2761_p6, %p2755_p3 }
  0x10   :  { %2765 = shalt.err (!%p2762_p7)
}
  0x11   :  { %s2861_s19 = smov 192   ;;  %s2862_s20 = smov 12  }
  0x12   :  { %38 = dma.hbm_to_vmem [thread:$0]  %s3078_s1, 4800, %s33_s10, [#allocation5], %s2861_s19, %s2861_s19, %s2862_s20  }
  0x13   :  { %s2863_s23 = smov [#allocation7]   ;;  %s2864_s25 = smov [#allocation2]  }
  0x14   :  { %s60_s24 = sshll.u32 %s2863_s23, 4  ;;  %s23_s26 = sshll.u32 %s2864_s25, 4  ;;  %s61_s24 = int_to_ptr.vmem [resolvable:$true] %s60_s24  ;;  %s24_s26 = int_to_ptr.vmem [resolvable:$true] %s23_s26 }
  0x15   :  { %s2766_s29 = scalar_lea.hbm %s3082_s5, 9216 }
  0x16   :  { %p2767_p8 = scmp.ne.s32.totalorder %s3082_s5, %s2766_s29  ;;  %p2770_p9 = scmp.lt.u32.totalorder %s2766_s29, %s3082_s5 }
  0x18   :  { %p2772_p10 = pnand %p2770_p9, %p2767_p8 }
  0x1a   :  { %2775 = shalt.err (!%p2772_p10)
}
  0x1b   :  { %s2776_s1 = scalar_lea.vmem %s61_s24, 9216  ;;  %p2781_p12 = scmp.lt.s32.totalorder %s61_s24, %s61_s24 }
  0x1c   :  { %p2777_p11 = scmp.ne.s32.totalorder %s61_s24, %s2776_s1  ;;  %p2782_p13 = scmp.lt.s32.totalorder %s2776_s1, %s2776_s1 }
  0x1e   :  { %p2783_p0 = por %p2782_p13, %p2781_p12 }
  0x20   :  { %p2784_p1 = pnand %p2783_p0, %p2777_p11 }
  0x22   :  { %2787 = shalt.err (!%p2784_p1)
}
  0x23   :  { %66 = dma.hbm_to_vmem [thread:$0]  %s3082_s5, 9216, %s61_s24, [#allocation8], %s2861_s19, %s2861_s19, %s2862_s20  }
  0x24   :  { %s2788_s17 = scalar_lea.hbm %s3077_s0, 256 }
  0x25   :  { %p2789_p2 = scmp.ne.s32.totalorder %s3077_s0, %s2788_s17  ;;  %p2792_p3 = scmp.lt.u32.totalorder %s2788_s17, %s3077_s0 }
  0x27   :  { %p2794_p4 = pnand %p2792_p3, %p2789_p2 }
  0x29   :  { %2797 = shalt.err (!%p2794_p4)
}
  0x2a   :  { %s2798_s25 = scalar_lea.vmem %s24_s26, 256  ;;  %p2803_p6 = scmp.lt.s32.totalorder %s24_s26, %s24_s26 }
  0x2b   :  { %p2799_p5 = scmp.ne.s32.totalorder %s24_s26, %s2798_s25  ;;  %p2804_p7 = scmp.lt.s32.totalorder %s2798_s25, %s2798_s25 }
  0x2d   :  { %p2805_p8 = por %p2804_p7, %p2803_p6 }
  0x2f   :  { %p2806_p9 = pnand %p2805_p8, %p2799_p5 }
  0x31   :  { %2809 = shalt.err (!%p2806_p9)
}
  0x32   :  { %26 = dma.hbm_to_vmem [thread:$0]  %s3077_s0, 256, %s24_s26, [#allocation3]  }
  0x33   :  { %s2865_s27 = smov [#allocation6]   ;;  %s2866_s29 = smov [#allocation9]  }
  0x34   :  { %s46_s28 = sshll.u32 %s2865_s27, 4  ;;  %s74_s30 = sshll.u32 %s2866_s29, 4  ;;  %s47_s28 = int_to_ptr.vmem [resolvable:$true] %s46_s28  ;;  %s75_s30 = int_to_ptr.vmem [resolvable:$true] %s74_s30 }
  0x35   :  { %s2810_s13 = scalar_lea.hbm %s3080_s3, 9216 }
  0x36   :  { %p2811_p10 = scmp.ne.s32.totalorder %s3080_s3, %s2810_s13  ;;  %p2814_p11 = scmp.lt.u32.totalorder %s2810_s13, %s3080_s3 }
  0x38   :  { %p2816_p12 = pnand %p2814_p11, %p2811_p10 }
  0x3a   :  { %2819 = shalt.err (!%p2816_p12)
}
  0x3b   :  { %s2820_s0 = scalar_lea.vmem %s47_s28, 9216  ;;  %p2825_p0 = scmp.lt.s32.totalorder %s47_s28, %s47_s28 }
  0x3c   :  { %p2821_p13 = scmp.ne.s32.totalorder %s47_s28, %s2820_s0  ;;  %p2826_p1 = scmp.lt.s32.totalorder %s2820_s0, %s2820_s0 }
  0x3e   :  { %p2827_p2 = por %p2826_p1, %p2825_p0 }
  0x40   :  { %p2828_p3 = pnand %p2827_p2, %p2821_p13 }
  0x42   :  { %2831 = shalt.err (!%p2828_p3)
}
  0x43   :  { %52 = dma.hbm_to_vmem [thread:$0]  %s3080_s3, 9216, %s47_s28, [#allocation5], %s2861_s19, %s2861_s19, %s2862_s20  }
  0x44   :  { %s2832_s21 = scalar_lea.hbm %s3084_s7, 3072 }
  0x45   :  { %p2833_p4 = scmp.ne.s32.totalorder %s3084_s7, %s2832_s21  ;;  %p2836_p5 = scmp.lt.u32.totalorder %s2832_s21, %s3084_s7 }
  0x47   :  { %p2838_p6 = pnand %p2836_p5, %p2833_p4 }
  0x49   :  { %2841 = shalt.err (!%p2838_p6)
}
  0x4a   :  { %s2842_s24 = scalar_lea.vmem %s75_s30, 3072  ;;  %p2847_p8 = scmp.lt.s32.totalorder %s75_s30, %s75_s30 }
  0x4b   :  { %p2843_p7 = scmp.ne.s32.totalorder %s75_s30, %s2842_s24  ;;  %p2848_p9 = scmp.lt.s32.totalorder %s2842_s24, %s2842_s24 }
  0x4d   :  { %p2849_p10 = por %p2848_p9, %p2847_p8 }
  0x4f   :  { %p2850_p11 = pnand %p2849_p10, %p2843_p7 }
  0x51   :  { %2853 = shalt.err (!%p2850_p11)
}
  0x52   :  { %s2867_s3 = smov 64   ;;  %s2868_s19 = smov 4  }
  0x53   :  { %80 = dma.hbm_to_vmem [thread:$0]  %s3084_s7, 3072, %s75_s30, [#allocation8], %s2867_s3, %s2867_s3, %s2868_s19  }
  0x54   :  { %2854 = dma.done.wait [#allocation3], 256  }
  0x55   :  { %2855 = vsyncadd [#allocation3], 4294967040 }
  0x56   :  { %2856 = dma.done.wait [#allocation5], 14016  }
  0x57   :  { %2857 = vsyncadd [#allocation5], 4294953280 }
  0x58   :  { %2858 = dma.done.wait [#allocation8], 12288  }
  0x59   :  { %2859 = vsyncadd [#allocation8], 4294955008  ;;  %v2869_v0 = vmov 0   ;;  %v2477_v1 = vld [vmem:[#allocation4 + $0x4] ss:$12 sps:$4 sm:$0xff]   ;;  %v100_v18 = vld [vmem:[#allocation2 + $0x8] sm:$0xff] }
  0x5a   :  { %425 = vmatprep.subr.bf16.mxu1 %v2869_v0  ;;  %v2479_v2 = vld [vmem:[#allocation4] ss:$12 sps:$4 sm:$0xff]   ;;  %384 = vmatprep.subr.bf16.mxu0 %v2477_v1  ;;  %v2480_v3 = vld [vmem:[#allocation4 + $0x1c] ss:$12 sps:$4 sm:$0xff]   ;;  %v2482_v4 = vld [vmem:[#allocation4 + $0x18] ss:$12 sps:$4 sm:$0xff]   ;;  %v102_v20 = vpack.c.bf16 %v100_v18, %v100_v18 }
  0x5b   :  { %385 = vmatpush1.bf16.msra.mxu0 %v2479_v2  ;;  %v2483_v5 = vld [vmem:[#allocation4 + $0x34] ss:$12 sps:$4 sm:$0xff]   ;;  %v2485_v6 = vld [vmem:[#allocation4 + $0x30] ss:$12 sps:$4 sm:$0xff]   ;;  %v2486_v7 = vld [vmem:[#allocation4 + $0x4c] ss:$12 sps:$4 sm:$0xff]  }
  0x5c   :  { %386 = vmatprep.subr.bf16.mxu0 %v2480_v3  ;;  %v2488_v8 = vld [vmem:[#allocation4 + $0x48] ss:$12 sps:$4 sm:$0xff]   ;;  %v2489_v10 = vld [vmem:[#allocation4 + $0x64] ss:$12 sps:$4 sm:$0xff]   ;;  %v2505_v11 = vld [vmem:[#allocation4 + $0x20] ss:$12 sps:$4 sm:$0xff]  }
  0x5d   :  { %v2501_v9 = vld [vmem:[#allocation4 + $0x8] ss:$12 sps:$4 sm:$0xff]   ;;  %v2491_v12 = vld [vmem:[#allocation4 + $0x60] ss:$12 sps:$4 sm:$0xff]   ;;  %v2509_v14 = vld [vmem:[#allocation4 + $0x38] ss:$12 sps:$4 sm:$0xff]  }
  0x5e   :  { %426 = vmatpush1.bf16.msra.mxu1 %v2501_v9  ;;  %v2492_v13 = vld [vmem:[#allocation4 + $0x7c] ss:$12 sps:$4 sm:$0xff]   ;;  %v2494_v15 = vld [vmem:[#allocation4 + $0x78] ss:$12 sps:$4 sm:$0xff]   ;;  %v2495_v16 = vld [vmem:[#allocation4 + $0x94] ss:$12 sps:$4 sm:$0xff]  }
  0x5f   :  { %387 = vmatpush1.bf16.msra.mxu0 %v2482_v4  ;;  %427 = vmatprep.subr.bf16.mxu1 %v2869_v0  ;;  %v2513_v17 = vld [vmem:[#allocation4 + $0x50] ss:$12 sps:$4 sm:$0xff]   ;;  %vm370_vm0 = vcmask 588800   ;;  %v2498_v21 = vld [vmem:[#allocation4 + $0xac] ss:$12 sps:$4 sm:$0xff]   ;;  %v151_v34 = vld [vmem:[#allocation4 + $0x120] sm:$0xff] }
  0x60   :  { %388 = vmatprep.subr.bf16.mxu0 %v2483_v5  ;;  %v2497_v19 = vld [vmem:[#allocation4 + $0x90] ss:$12 sps:$4 sm:$0xff]   ;;  %2129 = vmatprep.mubr.msk.bf16.mxu0 %vm370_vm0, %v102_v20  ;;  %v2517_v22 = vld [vmem:[#allocation4 + $0x68] ss:$12 sps:$4 sm:$0xff]   ;;  %v2520_v25 = vld [vmem:[#allocation4 + $0x80] ss:$12 sps:$4 sm:$0xff]   ;;  %v2125_v37 = vcombine.low %v151_v34, %v151_v34  ;;  %v2126_v38 = vcombine.high %v151_v34, %v151_v34  ;;  %v155_v34 = vlaneseq }
  0x61   :  { %2130 = vmatprep.mubr.msk.bf16.mxu1 %vm370_vm0, %v102_v20  ;;  %v2500_v23 = vld [vmem:[#allocation4 + $0xa8] ss:$12 sps:$4 sm:$0xff]   ;;  %v2502_v24 = vld [vmem:[#allocation4 + $0xc4] ss:$12 sps:$4 sm:$0xff]   ;;  %v2504_v26 = vld [vmem:[#allocation4 + $0xc0] ss:$12 sps:$4 sm:$0xff]  }
  0x62   :  { %428 = vmatpush1.bf16.msra.mxu1 %v2505_v11  ;;  %v2506_v27 = vld [vmem:[#allocation4 + $0xdc] ss:$12 sps:$4 sm:$0xff]   ;;  %v2521_v28 = vld [vmem:[#allocation4 + $0x98] ss:$12 sps:$4 sm:$0xff]   ;;  %v2510_v30 = vld [vmem:[#allocation4 + $0xf4] ss:$12 sps:$4 sm:$0xff]  }
  0x63   :  { %389 = vmatpush1.bf16.msra.mxu0 %v2485_v6  ;;  %429 = vmatprep.subr.bf16.mxu1 %v2869_v0  ;;  %v2508_v29 = vld [vmem:[#allocation4 + $0xd8] ss:$12 sps:$4 sm:$0xff]   ;;  %v2522_v31 = vld [vmem:[#allocation4 + $0xb0] ss:$12 sps:$4 sm:$0xff]   ;;  %v2523_v35 = vld [vmem:[#allocation4 + $0xc8] ss:$12 sps:$4 sm:$0xff]  }
  0x64   :  { %390 = vmatprep.subr.bf16.mxu0 %v2486_v7  ;;  %v2512_v32 = vld [vmem:[#allocation4 + $0xf0] ss:$12 sps:$4 sm:$0xff]   ;;  %v2514_v33 = vld [vmem:[#allocation4 + $0x10c] ss:$12 sps:$4 sm:$0xff]   ;;  %v2516_v36 = vld [vmem:[#allocation4 + $0x108] ss:$12 sps:$4 sm:$0xff]  }
  0x65   :  { %vm374_vm1 = vcmask 1043456   ;;  %v2524_v39 = vld [vmem:[#allocation4 + $0xe0] ss:$12 sps:$4 sm:$0xff]   ;;  %v99_v41 = vld [vmem:[#allocation2] sm:$0xff]  ;;  %v2525_v43 = vld [vmem:[#allocation4 + $0xf8] ss:$12 sps:$4 sm:$0xff]  }
  0x66   :  { %430 = vmatpush1.bf16.msra.mxu1 %v2509_v14  ;;  %v376_v40 = vsel %vm374_vm1, %v2125_v37, 0  ;;  %v2530_v42 = vld [vmem:[#allocation6 + $0x4] ss:$12 sps:$4 sm:$0xff]   ;;  %v101_v44 = vpack.c.bf16 %v99_v41, %v99_v41  ;;  %v2528_v46 = vld [vmem:[#allocation6] ss:$12 sps:$4 sm:$0xff]   ;;  %vm2871_vm2 = vmmov 0  }
  0x67   :  { %391 = vmatpush1.bf16.msra.mxu0 %v2488_v8  ;;  %431 = vmatprep.subr.bf16.mxu1 %v2869_v0  ;;  %v2526_v45 = vld [vmem:[#allocation4 + $0x110] ss:$12 sps:$4 sm:$0xff]   ;;  %v2533_v47 = vld [vmem:[#allocation6 + $0x1c] ss:$12 sps:$4 sm:$0xff]   ;;  %v2536_v50 = vld [vmem:[#allocation6 + $0x34] ss:$12 sps:$4 sm:$0xff]  }
  0x68   :  { %392 = vmatprep.subr.bf16.mxu0 %v2489_v10  ;;  %v2527_v48 = vld [vmem:[#allocation4 + $0x128] ss:$0 sps:$4 sm:$0xff]   ;;  %v2531_v49 = vld [vmem:[#allocation6 + $0x18] ss:$12 sps:$4 sm:$0xff]   ;;  %v2555_v53 = vld [vmem:[#allocation6 + $0xc8] ss:$12 sps:$4 sm:$0xff]  }
  0x69   :  { %v382_v51 = vsel %vm374_vm1, %v2527_v48, 0  ;;  %v2534_v52 = vld [vmem:[#allocation6 + $0x30] ss:$12 sps:$4 sm:$0xff]   ;;  %v2539_v54 = vld [vmem:[#allocation6 + $0x4c] ss:$12 sps:$4 sm:$0xff]  }
  0x6a   :  { %432 = vmatpush1.bf16.msra.mxu1 %v2513_v17  ;;  %v2556_v55 = vld [vmem:[#allocation6 + $0x8] ss:$12 sps:$4 sm:$0xff]   ;;  %v2560_v56 = vld [vmem:[#allocation6 + $0xe0] ss:$12 sps:$4 sm:$0xff]   ;;  %v2542_v58 = vld [vmem:[#allocation6 + $0x64] ss:$12 sps:$4 sm:$0xff]  }
  0x6b   :  { %393 = vmatpush1.bf16.msra.mxu0 %v2491_v12  ;;  %433 = vmatprep.subr.bf16.mxu1 %v2869_v0  ;;  %v2537_v57 = vld [vmem:[#allocation6 + $0x48] ss:$12 sps:$4 sm:$0xff]   ;;  %v2561_v59 = vld [vmem:[#allocation6 + $0x20] ss:$12 sps:$4 sm:$0xff]   ;;  %v2565_v60 = vld [vmem:[#allocation6 + $0xf8] ss:$12 sps:$4 sm:$0xff]  }
  0x6c   :  { %394 = vmatprep.subr.bf16.mxu0 %v2492_v13  ;;  %v2540_v61 = vld [vmem:[#allocation6 + $0x60] ss:$12 sps:$4 sm:$0xff]   ;;  %v2545_v62 = vld [vmem:[#allocation6 + $0x7c] ss:$12 sps:$4 sm:$0xff]   ;;  %v2566_v63 = vld [vmem:[#allocation6 + $0x38] ss:$12 sps:$4 sm:$0xff]  }
  0x6d   :  { %v2570_v1 = vld [vmem:[#allocation6 + $0x110] ss:$12 sps:$4 sm:$0xff]   ;;  %v2543_v2 = vld [vmem:[#allocation6 + $0x78] ss:$12 sps:$4 sm:$0xff]   ;;  %v2548_v3 = vld [vmem:[#allocation6 + $0x94] ss:$12 sps:$4 sm:$0xff]  }
  0x6e   :  { %434 = vmatpush1.bf16.msra.mxu1 %v2517_v22  ;;  %v2571_v4 = vld [vmem:[#allocation6 + $0x50] ss:$12 sps:$4 sm:$0xff]   ;;  %v2575_v5 = vld [vmem:[#allocation6 + $0x128] ss:$12 sps:$4 sm:$0xff]   ;;  %v2551_v7 = vld [vmem:[#allocation6 + $0xac] ss:$12 sps:$4 sm:$0xff]  }
  0x6f   :  { %395 = vmatpush1.bf16.msra.mxu0 %v2494_v15  ;;  %435 = vmatprep.subr.bf16.mxu1 %v2869_v0  ;;  %v2546_v6 = vld [vmem:[#allocation6 + $0x90] ss:$12 sps:$4 sm:$0xff]   ;;  %v2576_v8 = vld [vmem:[#allocation6 + $0x68] ss:$12 sps:$4 sm:$0xff]   ;;  %v2580_v9 = vld [vmem:[#allocation6 + $0x140] ss:$12 sps:$4 sm:$0xff]  }
  0x70   :  { %396 = vmatprep.subr.bf16.mxu0 %v2495_v16  ;;  %v2549_v10 = vld [vmem:[#allocation6 + $0xa8] ss:$12 sps:$4 sm:$0xff]   ;;  %v2554_v11 = vld [vmem:[#allocation6 + $0xc4] ss:$12 sps:$4 sm:$0xff]   ;;  %v2581_v12 = vld [vmem:[#allocation6 + $0x80] ss:$12 sps:$4 sm:$0xff]  }
  0x71   :  { %v2552_v13 = vld [vmem:[#allocation6 + $0xc0] ss:$12 sps:$4 sm:$0xff]   ;;  %v2559_v14 = vld [vmem:[#allocation6 + $0xdc] ss:$12 sps:$4 sm:$0xff]   ;;  %v2557_v15 = vld [vmem:[#allocation6 + $0xd8] ss:$12 sps:$4 sm:$0xff]  }
  0x72   :  { %436 = vmatpush1.bf16.msra.mxu1 %v2520_v25  ;;  %v2564_v16 = vld [vmem:[#allocation6 + $0xf4] ss:$12 sps:$4 sm:$0xff]   ;;  %v2562_v17 = vld [vmem:[#allocation6 + $0xf0] ss:$12 sps:$4 sm:$0xff]   ;;  %v2569_v18 = vld [vmem:[#allocation6 + $0x10c] ss:$12 sps:$4 sm:$0xff]  }
  0x73   :  { %397 = vmatpush1.bf16.msra.mxu0 %v2497_v19  ;;  %437 = vmatprep.subr.bf16.mxu1 %v2869_v0  ;;  %v2567_v19 = vld [vmem:[#allocation6 + $0x108] ss:$12 sps:$4 sm:$0xff]   ;;  %v2574_v20 = vld [vmem:[#allocation6 + $0x124] ss:$12 sps:$4 sm:$0xff]   ;;  %v3013_v37 = vld [vmem:[%s3079_s2] sm:$0x7] }
  0x74   :  { %398 = vmatprep.subr.bf16.mxu0 %v2498_v21  ;;  %v2572_v21 = vld [vmem:[#allocation6 + $0x120] ss:$12 sps:$4 sm:$0xff]   ;;  %v2579_v22 = vld [vmem:[#allocation6 + $0x13c] ss:$12 sps:$4 sm:$0xff]   ;;  %v2585_v25 = vld [vmem:[#allocation6 + $0x158] ss:$12 sps:$4 sm:$0xff]  }
  0x76   :  { %438 = vmatpush1.bf16.msra.mxu1 %v2521_v28  ;;  %v2589_v28 = vld [vmem:[#allocation6 + $0x16c] ss:$12 sps:$4 sm:$0xff]  }
  0x77   :  { %399 = vmatpush1.bf16.msra.mxu0 %v2500_v23  ;;  %439 = vmatprep.subr.bf16.mxu1 %v2869_v0  ;;  %v2577_v23 = vld [vmem:[#allocation6 + $0x138] ss:$12 sps:$4 sm:$0xff]  }
  0x78   :  { %400 = vmatprep.subr.bf16.mxu0 %v2502_v24  ;;  %v2584_v24 = vld [vmem:[#allocation6 + $0x154] ss:$12 sps:$4 sm:$0xff]  }
  0x7a   :  { %440 = vmatpush1.bf16.msra.mxu1 %v2522_v31  ;;  %v2591_v31 = vld [vmem:[#allocation6 + $0xb0] ss:$12 sps:$4 sm:$0xff]  }
  0x7b   :  { %401 = vmatpush1.bf16.msra.mxu0 %v2504_v26  ;;  %441 = vmatprep.subr.bf16.mxu1 %v2869_v0  ;;  %v2582_v26 = vld [vmem:[#allocation6 + $0x150] ss:$12 sps:$4 sm:$0xff]  }
  0x7c   :  { %402 = vmatprep.subr.bf16.mxu0 %v2506_v27  ;;  %v2586_v27 = vld [vmem:[#allocation6 + $0x98] ss:$12 sps:$4 sm:$0xff]  }
  0x7e   :  { %442 = vmatpush1.bf16.msra.mxu1 %v2523_v35  ;;  %v156_v35 = vshrl.u32 %v155_v34, 7  ;;  %v2642_v34 = vld [vmem:[#allocation7 + $0x90] ss:$12 sps:$4 sm:$0xff]  }
  0x7f   :  { %403 = vmatpush1.bf16.msra.mxu0 %v2508_v29  ;;  %443 = vmatprep.subr.bf16.mxu1 %v2869_v0  ;;  %v2590_v29 = vld [vmem:[#allocation6 + $0x170] ss:$12 sps:$4 sm:$0xff]  }
  0x80   :  { %404 = vmatprep.subr.bf16.mxu0 %v2510_v30  ;;  %v2587_v30 = vld [vmem:[#allocation6 + $0x168] ss:$12 sps:$4 sm:$0xff]  }
  0x82   :  { %444 = vmatpush1.bf16.msra.mxu1 %v2524_v39 }
  0x83   :  { %405 = vmatpush1.bf16.msra.mxu0 %v2512_v32  ;;  %445 = vmatprep.subr.bf16.mxu1 %v2869_v0  ;;  %v2594_v32 = vld [vmem:[#allocation6 + $0x184] ss:$12 sps:$4 sm:$0xff]  }
  0x84   :  { %406 = vmatprep.subr.bf16.mxu0 %v2514_v33  ;;  %v2870_v33 = vmov 0.0  }
  0x86   :  { %446 = vmatpush1.bf16.msra.mxu1 %v2525_v43 }
  0x87   :  { %407 = vmatpush1.bf16.msra.mxu0 %v2516_v36  ;;  %447 = vmatprep.subr.bf16.mxu1 %v2869_v0  ;;  %v3008_v36 = vsub.s32 0, %v156_v35 }
  0x88   :  { %2128 = vmatprep.subr.msk.bf16.mxu0 %vm374_vm1, %v2126_v38  ;;  %v3015_v38 = vsub.s32 1, %v156_v35 }
  0x89   :  { %v158_v39 = vrot.slane %v3013_v37, %v3008_v36 }
  0x8a   :  { %448 = vmatpush1.bf16.msra.mxu1 %v2526_v45 }
  0x8b   :  { %409 = vmatpush1.bf16.msra.mxu0 %v376_v40  ;;  %449 = vmatprep.subr.bf16.mxu1 %v2869_v0  ;;  %v162_v40 = vrot.slane %v3013_v37, %v3015_v38 }
  0x8c   :  { %968 = vmatprep.subr.bf16.mxu0 %v2530_v42 }
  0x8e   :  { %417 = vmatmul.mubr.bf16.vlgmr.msra.gmra.mrb[0].mxu0 %v101_v44  ;;  %450 = vmatpush1.bf16.msra.mxu1 %v382_v51  ;;  %v2595_v51 = vld [vmem:[#allocation6 + $0x188] ss:$12 sps:$4 sm:$0xff]  }
  0x8f   :  { %969 = vmatpush1.bf16.msra.mxu0 %v2528_v46  ;;  %2300 = vmatprep.subr.bf16.mxu1 %v2555_v53  ;;  %v2598_v53 = vld [vmem:[#allocation6 + $0x19c] ss:$12 sps:$4 sm:$0xff]  }
  0x90   :  { %970 = vmatprep.subr.bf16.mxu0 %v2533_v47 }
  0x91   :  { %458 = vmatmul.mubr.bf16.vlgmr.msra.gmra.mrb[0].mxu1 %v101_v44 }
  0x92   :  { %2301 = vmatpush3.bf16.msra.mxu1 %v2556_v55  ;;  %v2599_v55 = vld [vmem:[#allocation6 + $0x1a0] ss:$12 sps:$4 sm:$0xff]  }
  0x93   :  { %971 = vmatpush1.bf16.msra.mxu0 %v2531_v49  ;;  %2302 = vmatprep.subr.bf16.mxu1 %v2560_v56 }
  0x94   :  { %972 = vmatprep.subr.bf16.mxu0 %v2536_v50  ;;  %v2592_v50 = vld [vmem:[#allocation6 + $0x180] ss:$12 sps:$4 sm:$0xff]  }
  0x96   :  { %2303 = vmatpush3.bf16.msra.mxu1 %v2561_v59 }
  0x97   :  { %973 = vmatpush1.bf16.msra.mxu0 %v2534_v52  ;;  %2304 = vmatprep.subr.bf16.mxu1 %v2565_v60 }
  0x98   :  { %974 = vmatprep.subr.bf16.mxu0 %v2539_v54  ;;  %v2596_v54 = vld [vmem:[#allocation6 + $0x198] ss:$12 sps:$4 sm:$0xff]  }
  0x9a   :  { %2305 = vmatpush3.bf16.msra.mxu1 %v2566_v63  ;;  %v2606_v63 = vld [vmem:[#allocation6 + $0x1cc] ss:$12 sps:$4 sm:$0xff]  }
  0x9b   :  { %975 = vmatpush1.bf16.msra.mxu0 %v2537_v57  ;;  %2306 = vmatprep.subr.bf16.mxu1 %v2570_v1  ;;  %v2602_v57 = vld [vmem:[#allocation6 + $0x1b4] ss:$12 sps:$4 sm:$0xff]  }
  0x9c   :  { %976 = vmatprep.subr.bf16.mxu0 %v2542_v58  ;;  %v2604_v1 = vld [vmem:[#allocation6 + $0x1c8] ss:$12 sps:$4 sm:$0xff]  }
  0x9e   :  { %2307 = vmatpush3.bf16.msra.mxu1 %v2571_v4  ;;  %v3027_v4 = vsub.s32 2, %v156_v35  ;;  %v2647_v35 = vld [vmem:[#allocation7 + $0xac] ss:$12 sps:$4 sm:$0xff]  }
  0x9f   :  { %977 = vmatpush1.bf16.msra.mxu0 %v2540_v61  ;;  %2308 = vmatprep.subr.bf16.mxu1 %v2575_v5  ;;  %v2600_v61 = vld [vmem:[#allocation6 + $0x1b0] ss:$12 sps:$4 sm:$0xff]   ;;  %v2608_v5 = vld [vmem:[#allocation6 + $0x1e0] ss:$12 sps:$4 sm:$0xff]  }
  0xa0   :  { %978 = vmatprep.subr.bf16.mxu0 %v2545_v62  ;;  %v2603_v62 = vld [vmem:[#allocation6 + $0x1b8] ss:$12 sps:$4 sm:$0xff]  }
  0xa2   :  { %2309 = vmatpush3.bf16.msra.mxu1 %v2576_v8  ;;  %v166_v8 = vrot.slane %v3013_v37, %v3027_v4  ;;  %v2645_v37 = vld [vmem:[#allocation7 + $0xa8] ss:$12 sps:$4 sm:$0xff]  }
  0xa3   :  { %979 = vmatpush1.bf16.msra.mxu0 %v2543_v2  ;;  %2310 = vmatprep.subr.bf16.mxu1 %v2580_v9  ;;  %v2607_v2 = vld [vmem:[#allocation6 + $0x1d0] ss:$12 sps:$4 sm:$0xff]   ;;  %v2612_v9 = vld [vmem:[#allocation6 + $0x1f8] ss:$12 sps:$4 sm:$0xff]  }
  0xa4   :  { %980 = vmatprep.subr.bf16.mxu0 %v2548_v3  ;;  %v2610_v3 = vld [vmem:[#allocation6 + $0x1e4] ss:$12 sps:$4 sm:$0xff]  }
  0xa6   :  { %2311 = vmatpush3.bf16.msra.mxu1 %v2581_v12 }
  0xa7   :  { %981 = vmatpush1.bf16.msra.mxu0 %v2546_v6  ;;  %2312 = vmatprep.subr.bf16.mxu1 %v2585_v25  ;;  %v2611_v6 = vld [vmem:[#allocation6 + $0x1e8] ss:$12 sps:$4 sm:$0xff]   ;;  %v2630_v25 = vld [vmem:[#allocation7 + $0x30] ss:$12 sps:$4 sm:$0xff]  }
  0xa8   :  { %982 = vmatprep.subr.bf16.mxu0 %v2551_v7  ;;  %v2614_v7 = vld [vmem:[#allocation6 + $0x1fc] ss:$12 sps:$4 sm:$0xff]  }
  0xaa   :  { %2313 = vmatpush3.bf16.msra.mxu1 %v2586_v27  ;;  %v2633_v27 = vld [vmem:[#allocation7 + $0x48] ss:$12 sps:$4 sm:$0xff]  }
  0xab   :  { %983 = vmatpush1.bf16.msra.mxu0 %v2549_v10  ;;  %2314 = vmatprep.subr.bf16.mxu1 %v2590_v29  ;;  %v2615_v10 = vld [vmem:[#allocation6 + $0x200] ss:$12 sps:$4 sm:$0xff]  }
  0xac   :  { %984 = vmatprep.subr.bf16.mxu0 %v2554_v11  ;;  %v2618_v11 = vld [vmem:[#allocation6 + $0x214] ss:$12 sps:$4 sm:$0xff]  }
  0xad   :  { %v2636_v29 = vld [vmem:[#allocation7 + $0x60] ss:$12 sps:$4 sm:$0xff]  }
  0xae   :  { %2315 = vmatpush3.bf16.msra.mxu1 %v2591_v31  ;;  %v2639_v31 = vld [vmem:[#allocation7 + $0x78] ss:$12 sps:$4 sm:$0xff]  }
  0xaf   :  { %985 = vmatpush1.bf16.msra.mxu0 %v2552_v13  ;;  %2393 = vmatprep.subr.bf16.mxu1 %v2870_v33  ;;  %v2616_v13 = vld [vmem:[#allocation6 + $0x210] ss:$12 sps:$4 sm:$0xff]  }
  0xb0   :  { %986 = vmatprep.subr.bf16.mxu0 %v2559_v14  ;;  %v2619_v14 = vld [vmem:[#allocation6 + $0x218] ss:$12 sps:$4 sm:$0xff]  }
  0xb3   :  { %987 = vmatpush1.bf16.msra.mxu0 %v2557_v15  ;;  %v2622_v15 = vld [vmem:[#allocation6 + $0x22c] ss:$12 sps:$4 sm:$0xff]  }
  0xb4   :  { %988 = vmatprep.subr.bf16.mxu0 %v2564_v16 }
  0xb7   :  { %989 = vmatpush1.bf16.msra.mxu0 %v2562_v17  ;;  %v2620_v17 = vld [vmem:[#allocation6 + $0x228] ss:$12 sps:$4 sm:$0xff]  }
  0xb8   :  { %990 = vmatprep.subr.bf16.mxu0 %v2569_v18  ;;  %v2623_v18 = vld [vmem:[#allocation6 + $0x230] ss:$12 sps:$4 sm:$0xff]  }
  0xbb   :  { %991 = vmatpush1.bf16.msra.mxu0 %v2567_v19  ;;  %v2626_v19 = vld [vmem:[#allocation7 + $0x4] ss:$12 sps:$4 sm:$0xff]  }
  0xbc   :  { %992 = vmatprep.subr.bf16.mxu0 %v2574_v20 }
  0xbf   :  { %993 = vmatpush1.bf16.msra.mxu0 %v2572_v21  ;;  %v2624_v21 = vld [vmem:[#allocation7] ss:$12 sps:$4 sm:$0xff]  }
  0xc0   :  { %994 = vmatprep.subr.bf16.mxu0 %v2579_v22  ;;  %v2629_v22 = vld [vmem:[#allocation7 + $0x1c] ss:$12 sps:$4 sm:$0xff]  }
  0xc3   :  { %995 = vmatpush1.bf16.msra.mxu0 %v2577_v23  ;;  %v2627_v23 = vld [vmem:[#allocation7 + $0x18] ss:$12 sps:$4 sm:$0xff]  }
  0xc4   :  { %996 = vmatprep.subr.bf16.mxu0 %v2584_v24  ;;  %v2632_v24 = vld [vmem:[#allocation7 + $0x34] ss:$12 sps:$4 sm:$0xff]  }
  0xc7   :  { %997 = vmatpush1.bf16.msra.mxu0 %v2582_v26  ;;  %v2635_v26 = vld [vmem:[#allocation7 + $0x4c] ss:$12 sps:$4 sm:$0xff]  }
  0xc8   :  { %998 = vmatprep.subr.bf16.mxu0 %v2589_v28  ;;  %v2638_v28 = vld [vmem:[#allocation7 + $0x64] ss:$12 sps:$4 sm:$0xff]  }
  0xcb   :  { %999 = vmatpush1.bf16.msra.mxu0 %v2587_v30  ;;  %v2641_v30 = vld [vmem:[#allocation7 + $0x7c] ss:$12 sps:$4 sm:$0xff]  }
  0xcc   :  { %1009 = vmatprep.subr.bf16.mxu0 %v2594_v32  ;;  %v2644_v32 = vld [vmem:[#allocation7 + $0x94] ss:$12 sps:$4 sm:$0xff]  }
 0x161   :  { %v418_v41 = vpop.f32.mrb[0].mxu0 }
 0x162   :  { %v419_v42 = vadd.f32 %v418_v41, %v158_v39  ;;  %v420_v43 = vpop.f32.mrb[1].mxu0  ;;  %v2650_v39 = vld [vmem:[#allocation7 + $0xc4] ss:$12 sps:$4 sm:$0xff]   ;;  %v2652_v41 = vld [vmem:[#allocation7 + $0x8] ss:$12 sps:$4 sm:$0xff]  }
 0x163   :  { %v421_v44 = vadd.f32 %v420_v43, %v162_v40  ;;  %v422_v45 = vpop.f32.mrb[2].mxu0  ;;  %v2651_v40 = vld [vmem:[#allocation7 + $0xc8] ss:$12 sps:$4 sm:$0xff]   ;;  %v2656_v43 = vld [vmem:[#allocation7 + $0xe0] ss:$12 sps:$4 sm:$0xff]  }
 0x164   :  { %v465_v46 = vmax.f32 %v419_v42, 0.0  ;;  %v423_v47 = vpop.f32.mrb[3].mxu0  ;;  %v459_v56 = vpop.f32.mrb[0].mxu1  ;;  %v2648_v42 = vld [vmem:[#allocation7 + $0xc0] ss:$12 sps:$4 sm:$0xff]  }
 0x165   :  { %v466_v48 = vmax.f32 %v421_v44, 0.0  ;;  %v461_v58 = vpop.f32.mrb[1].mxu1  ;;  %v460_v12 = vadd.f32 %v459_v56, %v166_v8  ;;  %v2655_v44 = vld [vmem:[#allocation7 + $0xdc] ss:$12 sps:$4 sm:$0xff]   ;;  %v2657_v45 = vld [vmem:[#allocation7 + $0x20] ss:$12 sps:$4 sm:$0xff]  }
 0x166   :  { %v468_v52 = vpack.c.bf16 %v465_v46, %v465_v46  ;;  %v462_v59 = vpop.f32.mrb[2].mxu1  ;;  %v2661_v46 = vld [vmem:[#allocation7 + $0xf8] ss:$12 sps:$4 sm:$0xff]   ;;  %v2676_v58 = vld [vmem:[#allocation7 + $0x140] ss:$12 sps:$4 sm:$0xff]  }
 0x167   :  { %v469_v49 = vpack.c.bf16 %v466_v48, %v466_v48  ;;  %v463_v60 = vpop.f32.mrb[3].mxu1  ;;  %v467_v16 = vmax.f32 %v460_v12, 0.0  ;;  %v2653_v47 = vld [vmem:[#allocation7 + $0xd8] ss:$12 sps:$4 sm:$0xff]   ;;  %v2660_v48 = vld [vmem:[#allocation7 + $0xf4] ss:$12 sps:$4 sm:$0xff]  }
 0x168   :  { %v2670_v56 = vld [vmem:[#allocation7 + $0x124] ss:$12 sps:$4 sm:$0xff]   ;;  %v2668_v59 = vld [vmem:[#allocation7 + $0x120] ss:$12 sps:$4 sm:$0xff]   ;;  %v2675_v60 = vld [vmem:[#allocation7 + $0x13c] ss:$12 sps:$4 sm:$0xff]  }
 0x169   :  { %1000 = vmatprep.mubr.bf16.mxu0 %v469_v49  ;;  %1082 = vmatprep.mubr.bf16.mxu1 %v469_v49  ;;  %v470_v20 = vpack.c.bf16 %v467_v16, %v467_v16  ;;  %v2662_v49 = vld [vmem:[#allocation7 + $0x38] ss:$12 sps:$4 sm:$0xff]   ;;  %v2687_v8 = vld [vmem:[#allocation7 + $0xb0] ss:$12 sps:$4 sm:$0xff]  }
 0x16a   :  { %1001 = vmatmul.mubr.bf16.vlgmr.msra.gmra.mrb[4].mxu0 %v468_v52  ;;  %1083 = vmatmul.mubr.bf16.vlgmr.msra.gmra.mrb[4].mxu1 %v468_v52  ;;  %v2665_v52 = vld [vmem:[#allocation7 + $0x10c] ss:$12 sps:$4 sm:$0xff]  }
 0x16b   :  { %1010 = vmatpush1.bf16.msra.mxu0 %v2592_v50  ;;  %2394 = vmatpush3.bf16.msra.mxu1 %v2595_v51  ;;  %v2666_v50 = vld [vmem:[#allocation7 + $0x110] ss:$12 sps:$4 sm:$0xff]  }
 0x16c   :  { %1011 = vmatprep.subr.bf16.mxu0 %v2598_v53  ;;  %2395 = vmatprep.subr.bf16.mxu1 %v2870_v33  ;;  %v2658_v51 = vld [vmem:[#allocation7 + $0xf0] ss:$12 sps:$4 sm:$0xff]  }
 0x16d   :  { %1041 = vmatprep.mubr.bf16.mxu0 %v2869_v0  ;;  %2409 = vmatprep.mubr.msk.bf16.mxu1 %vm2871_vm2, %v2870_v33  ;;  %v2667_v53 = vld [vmem:[#allocation7 + $0x50] ss:$12 sps:$4 sm:$0xff]  }
 0x16f   :  { %1012 = vmatpush1.bf16.msra.mxu0 %v2596_v54  ;;  %2396 = vmatpush3.bf16.msra.mxu1 %v2599_v55  ;;  %v2671_v54 = vld [vmem:[#allocation7 + $0x128] ss:$12 sps:$4 sm:$0xff]  }
 0x170   :  { %1013 = vmatprep.subr.bf16.mxu0 %v2602_v57  ;;  %2397 = vmatprep.subr.bf16.mxu1 %v2870_v33  ;;  %v2663_v55 = vld [vmem:[#allocation7 + $0x108] ss:$12 sps:$4 sm:$0xff]  }
 0x171   :  { %v2672_v57 = vld [vmem:[#allocation7 + $0x68] ss:$12 sps:$4 sm:$0xff]  }
 0x173   :  { %1014 = vmatpush1.bf16.msra.mxu0 %v2600_v61  ;;  %2398 = vmatpush3.bf16.msra.mxu1 %v2603_v62  ;;  %v2677_v61 = vld [vmem:[#allocation7 + $0x80] ss:$12 sps:$4 sm:$0xff]   ;;  %v2673_v62 = vld [vmem:[#allocation7 + $0x138] ss:$12 sps:$4 sm:$0xff]  }
 0x174   :  { %1015 = vmatprep.subr.bf16.mxu0 %v2606_v63  ;;  %2399 = vmatprep.subr.bf16.mxu1 %v2870_v33  ;;  %v2680_v63 = vld [vmem:[#allocation7 + $0x154] ss:$12 sps:$4 sm:$0xff]  }
 0x177   :  { %1016 = vmatpush1.bf16.msra.mxu0 %v2604_v1  ;;  %2400 = vmatpush3.bf16.msra.mxu1 %v2607_v2  ;;  %v2681_v1 = vld [vmem:[#allocation7 + $0x158] ss:$12 sps:$4 sm:$0xff]   ;;  %v2678_v2 = vld [vmem:[#allocation7 + $0x150] ss:$12 sps:$4 sm:$0xff]  }
 0x178   :  { %1017 = vmatprep.subr.bf16.mxu0 %v2610_v3  ;;  %2401 = vmatprep.subr.bf16.mxu1 %v2870_v33  ;;  %v2682_v3 = vld [vmem:[#allocation7 + $0x98] ss:$12 sps:$4 sm:$0xff]  }
 0x17b   :  { %1018 = vmatpush1.bf16.msra.mxu0 %v2608_v5  ;;  %2402 = vmatpush3.bf16.msra.mxu1 %v2611_v6  ;;  %v2685_v5 = vld [vmem:[#allocation7 + $0x16c] ss:$12 sps:$4 sm:$0xff]   ;;  %v2686_v6 = vld [vmem:[#allocation7 + $0x170] ss:$12 sps:$4 sm:$0xff]  }
 0x17c   :  { %1019 = vmatprep.subr.bf16.mxu0 %v2614_v7  ;;  %2403 = vmatprep.subr.bf16.mxu1 %v2870_v33  ;;  %v2683_v7 = vld [vmem:[#allocation7 + $0x168] ss:$12 sps:$4 sm:$0xff]  }
 0x17f   :  { %1020 = vmatpush1.bf16.msra.mxu0 %v2612_v9  ;;  %2404 = vmatpush3.bf16.msra.mxu1 %v2615_v10  ;;  %v2690_v9 = vld [vmem:[#allocation7 + $0x184] ss:$12 sps:$4 sm:$0xff]  }
 0x180   :  { %1021 = vmatprep.subr.bf16.mxu0 %v2618_v11  ;;  %2405 = vmatprep.subr.bf16.mxu1 %v2870_v33 }
 0x183   :  { %1022 = vmatpush1.bf16.msra.mxu0 %v2616_v13  ;;  %2406 = vmatpush3.bf16.msra.mxu1 %v2619_v14 }
 0x184   :  { %1023 = vmatprep.subr.bf16.mxu0 %v2622_v15  ;;  %2407 = vmatprep.subr.bf16.mxu1 %v2870_v33  ;;  %v567_v15 = vld [vmem:[%s3081_s4] sm:$0x7] }
 0x185   :  { %v580_v16 = vrot.slane %v567_v15, %v3027_v4 }
 0x187   :  { %1024 = vmatpush1.bf16.msra.mxu0 %v2620_v17  ;;  %2408 = vmatpush3.bf16.msra.mxu1 %v2623_v18  ;;  %v572_v17 = vrot.slane %v567_v15, %v3008_v36  ;;  %v576_v18 = vrot.slane %v567_v15, %v3015_v38  ;;  %v2736_v15 = vld [vmem:[#allocation9 + $0x68] sm:$0xff]  }
 0x188   :  { %1633 = vmatprep.subr.bf16.mxu1 %v2626_v19  ;;  %2331 = vmatprep.subr.bf16.mxu0 %v2651_v40  ;;  %v2694_v40 = vld [vmem:[#allocation7 + $0x19c] ss:$12 sps:$4 sm:$0xff]  }
 0x18a   :  { %1042 = vmatmul.mubr.bf16.vlgmr.msra.gmra.mrb[4].mxu0 %v470_v20  ;;  %2410 = vmatmul.mubr.bf16.vlgmr.msra.gmra.mrb[8].mxu1 %v470_v20 }
 0x18b   :  { %1634 = vmatpush1.bf16.msra.mxu1 %v2624_v21  ;;  %2332 = vmatpush3.bf16.msra.mxu0 %v2652_v41  ;;  %v2692_v41 = vld [vmem:[#allocation7 + $0x198] ss:$12 sps:$4 sm:$0xff]  }
 0x18c   :  { %1635 = vmatprep.subr.bf16.mxu1 %v2629_v22  ;;  %2333 = vmatprep.subr.bf16.mxu0 %v2656_v43  ;;  %v2698_v43 = vld [vmem:[#allocation7 + $0x1b4] ss:$12 sps:$4 sm:$0xff]  }
 0x18f   :  { %1636 = vmatpush1.bf16.msra.mxu1 %v2627_v23  ;;  %2334 = vmatpush3.bf16.msra.mxu0 %v2657_v45  ;;  %v2699_v45 = vld [vmem:[#allocation7 + $0x1b8] ss:$12 sps:$4 sm:$0xff]  }
 0x190   :  { %1637 = vmatprep.subr.bf16.mxu1 %v2632_v24  ;;  %2335 = vmatprep.subr.bf16.mxu0 %v2661_v46  ;;  %v2702_v46 = vld [vmem:[#allocation7 + $0x1cc] ss:$12 sps:$4 sm:$0xff]  }
 0x193   :  { %1638 = vmatpush1.bf16.msra.mxu1 %v2630_v25  ;;  %2336 = vmatpush3.bf16.msra.mxu0 %v2662_v49  ;;  %v2706_v49 = vld [vmem:[#allocation7 + $0x1e4] ss:$12 sps:$4 sm:$0xff]  }
 0x194   :  { %1639 = vmatprep.subr.bf16.mxu1 %v2635_v26  ;;  %2337 = vmatprep.subr.bf16.mxu0 %v2666_v50  ;;  %v2707_v50 = vld [vmem:[#allocation7 + $0x1e8] ss:$12 sps:$4 sm:$0xff]  }
 0x197   :  { %1640 = vmatpush1.bf16.msra.mxu1 %v2633_v27  ;;  %2338 = vmatpush3.bf16.msra.mxu0 %v2667_v53  ;;  %v2711_v53 = vld [vmem:[#allocation7 + $0x200] ss:$12 sps:$4 sm:$0xff]  }
 0x198   :  { %1641 = vmatprep.subr.bf16.mxu1 %v2638_v28  ;;  %2339 = vmatprep.subr.bf16.mxu0 %v2671_v54  ;;  %v2714_v54 = vld [vmem:[#allocation7 + $0x214] ss:$12 sps:$4 sm:$0xff]  }
 0x19b   :  { %1642 = vmatpush1.bf16.msra.mxu1 %v2636_v29  ;;  %2340 = vmatpush3.bf16.msra.mxu0 %v2672_v57  ;;  %v2718_v57 = vld [vmem:[#allocation7 + $0x22c] ss:$12 sps:$4 sm:$0xff]  }
 0x19c   :  { %1643 = vmatprep.subr.bf16.mxu1 %v2641_v30  ;;  %2341 = vmatprep.subr.bf16.mxu0 %v2676_v58  ;;  %v2716_v58 = vld [vmem:[#allocation7 + $0x228] ss:$12 sps:$4 sm:$0xff]  }
 0x19f   :  { %1644 = vmatpush1.bf16.msra.mxu1 %v2639_v31  ;;  %2342 = vmatpush3.bf16.msra.mxu0 %v2677_v61 }
 0x1a0   :  { %1645 = vmatprep.subr.bf16.mxu1 %v2644_v32  ;;  %2343 = vmatprep.subr.bf16.mxu0 %v2681_v1  ;;  %v2722_v1 = vld [vmem:[#allocation9] sm:$0xff]  }
 0x1a3   :  { %1646 = vmatpush1.bf16.msra.mxu1 %v2642_v34  ;;  %2344 = vmatpush3.bf16.msra.mxu0 %v2682_v3  ;;  %v2723_v3 = vld [vmem:[#allocation9 + $0x88] sm:$0xff]  }
 0x1a4   :  { %1647 = vmatprep.subr.bf16.mxu1 %v2647_v35  ;;  %2345 = vmatprep.subr.bf16.mxu0 %v2686_v6  ;;  %v2688_v35 = vld [vmem:[#allocation7 + $0x180] ss:$12 sps:$4 sm:$0xff]   ;;  %v2727_v6 = vld [vmem:[#allocation9 + $0x50] sm:$0xff]  }
 0x1a7   :  { %1648 = vmatpush1.bf16.msra.mxu1 %v2645_v37  ;;  %2346 = vmatpush3.bf16.msra.mxu0 %v2687_v8  ;;  %v2691_v37 = vld [vmem:[#allocation7 + $0x188] ss:$12 sps:$4 sm:$0xff]  }
 0x1a8   :  { %1649 = vmatprep.subr.bf16.mxu1 %v2650_v39  ;;  %2413 = vmatprep.subr.bf16.mxu0 %v2870_v33  ;;  %v2728_v8 = vld [vmem:[#allocation9 + $0x10] sm:$0xff]  }
 0x1ab   :  { %1650 = vmatpush1.bf16.msra.mxu1 %v2648_v42  ;;  %v2695_v42 = vld [vmem:[#allocation7 + $0x1a0] ss:$12 sps:$4 sm:$0xff]  }
 0x1ac   :  { %1651 = vmatprep.subr.bf16.mxu1 %v2655_v44  ;;  %v2696_v44 = vld [vmem:[#allocation7 + $0x1b0] ss:$12 sps:$4 sm:$0xff]  }
 0x1af   :  { %1652 = vmatpush1.bf16.msra.mxu1 %v2653_v47  ;;  %v2700_v47 = vld [vmem:[#allocation7 + $0x1c8] ss:$12 sps:$4 sm:$0xff]  }
 0x1b0   :  { %1653 = vmatprep.subr.bf16.mxu1 %v2660_v48  ;;  %v2703_v48 = vld [vmem:[#allocation7 + $0x1d0] ss:$12 sps:$4 sm:$0xff]  }
 0x1b3   :  { %1654 = vmatpush1.bf16.msra.mxu1 %v2658_v51  ;;  %v2710_v51 = vld [vmem:[#allocation7 + $0x1fc] ss:$12 sps:$4 sm:$0xff]  }
 0x1b4   :  { %1655 = vmatprep.subr.bf16.mxu1 %v2665_v52  ;;  %v2708_v52 = vld [vmem:[#allocation7 + $0x1f8] ss:$12 sps:$4 sm:$0xff]  }
 0x1b7   :  { %1656 = vmatpush1.bf16.msra.mxu1 %v2663_v55  ;;  %v2712_v55 = vld [vmem:[#allocation7 + $0x210] ss:$12 sps:$4 sm:$0xff]  }
 0x1b8   :  { %1657 = vmatprep.subr.bf16.mxu1 %v2670_v56  ;;  %v2715_v56 = vld [vmem:[#allocation7 + $0x218] ss:$12 sps:$4 sm:$0xff]  }
 0x1bb   :  { %1658 = vmatpush1.bf16.msra.mxu1 %v2668_v59  ;;  %v2719_v59 = vld [vmem:[#allocation7 + $0x230] ss:$12 sps:$4 sm:$0xff]  }
 0x1bc   :  { %1659 = vmatprep.subr.bf16.mxu1 %v2675_v60 }
 0x1bf   :  { %1660 = vmatpush1.bf16.msra.mxu1 %v2673_v62  ;;  %v2720_v62 = vld [vmem:[#allocation9 + $0x80] sm:$0xff]  }
 0x1c0   :  { %1661 = vmatprep.subr.bf16.mxu1 %v2680_v63  ;;  %v2721_v63 = vld [vmem:[#allocation9 + $0x40] sm:$0xff]  }
 0x1c3   :  { %1662 = vmatpush1.bf16.msra.mxu1 %v2678_v2  ;;  %v2724_v2 = vld [vmem:[#allocation9 + $0x48] sm:$0xff]  }
 0x1c4   :  { %1663 = vmatprep.subr.bf16.mxu1 %v2685_v5  ;;  %v2725_v5 = vld [vmem:[#allocation9 + $0x8] sm:$0xff]  }
 0x1c7   :  { %1664 = vmatpush1.bf16.msra.mxu1 %v2683_v7  ;;  %v2726_v7 = vld [vmem:[#allocation9 + $0x90] sm:$0xff]  }
 0x1c8   :  { %1674 = vmatprep.subr.bf16.mxu1 %v2690_v9  ;;  %v2730_v9 = vld [vmem:[#allocation9 + $0x58] sm:$0xff]  }
 0x23d   :  { %v2316_v10 = vpop.f32.mrb[4].mxu1 }
 0x23e   :  { %v2317_v11 = vpop.f32.mrb[5].mxu1 }
 0x23f   :  { %v2318_v12 = vadd.f32 %v2317_v11, %v2316_v10  ;;  %v2319_v13 = vpop.f32.mrb[6].mxu1  ;;  %v2729_v10 = vld [vmem:[#allocation9 + $0x98] sm:$0xff]  }
 0x240   :  { %v2320_v14 = vpop.f32.mrb[7].mxu1  ;;  %v2731_v11 = vld [vmem:[#allocation9 + $0x18] sm:$0xff]   ;;  %v2732_v13 = vld [vmem:[#allocation9 + $0xa0] sm:$0xff]  }
 0x241   :  { %v1085_v19 = vadd.f32 %v2318_v12, %v580_v16  ;;  %v2733_v12 = vld [vmem:[#allocation9 + $0x60] sm:$0xff]   ;;  %v2735_v16 = vld [vmem:[#allocation9 + $0xa8] sm:$0xff]  }
 0x242   :  { %v2734_v14 = vld [vmem:[#allocation9 + $0x20] sm:$0xff]  }
 0x25d   :  { %v1043_v20 = vpop.f32.mrb[4].mxu0  ;;  %v1124_v21 = vpop.f32.mrb[8].mxu1 }
 0x25e   :  { %v2453_v22 = vadd.f32 %v1043_v20, %v572_v17  ;;  %v3042_v23 = vadd.f32 %v1124_v21, %v1085_v19  ;;  %v1045_v24 = vpop.f32.mrb[5].mxu0  ;;  %v2411_v25 = vpop.f32.mrb[9].mxu1  ;;  %v2737_v17 = vld [vmem:[#allocation9 + $0x28] sm:$0xff]   ;;  %v2739_v19 = vld [vmem:[#allocation9 + $0x70] sm:$0xff]   ;;  %v2741_v21 = vld [vmem:[#allocation9 + $0xb8] sm:$0xff]  }
 0x25f   :  { %v2454_v26 = vadd.f32 %v1045_v24, %v576_v18  ;;  %v1047_v27 = vpop.f32.mrb[6].mxu0  ;;  %v1127_v28 = vpop.f32.mrb[10].mxu1  ;;  %v2738_v18 = vld [vmem:[#allocation9 + $0xb0] sm:$0xff]  }
 0x260   :  { %v1130_v29 = vmax.f32 %v2453_v22, 0.0  ;;  %v1048_v30 = vpop.f32.mrb[7].mxu0  ;;  %v2412_v31 = vpop.f32.mrb[11].mxu1  ;;  %v1132_v60 = vmax.f32 %v3042_v23, 0.0  ;;  %v2740_v20 = vld [vmem:[#allocation9 + $0x30] sm:$0xff]   ;;  %v2742_v22 = vld [vmem:[#allocation9 + $0x78] sm:$0xff]  }
 0x261   :  { %v1131_v32 = vmax.f32 %v2454_v26, 0.0  ;;  %v2743_v23 = vld [vmem:[#allocation9 + $0x38] sm:$0xff]  }
 0x262   :  { %v1133_v39 = vpack.c.bf16 %v1130_v29, %v1130_v29  ;;  %v1135_v61 = vpack.c.bf16 %v1132_v60, %v1132_v60  ;;  %v1232_v29 = vld [vmem:[%s3083_s6] sm:$0x7] }
 0x263   :  { %v1134_v34 = vpack.c.bf16 %v1131_v32, %v1131_v32  ;;  %v1245_v30 = vrot.slane %v1232_v29, %v3027_v4  ;;  %v1241_v31 = vrot.slane %v1232_v29, %v3015_v38 }
 0x265   :  { %1665 = vmatprep.mubr.bf16.mxu1 %v1134_v34  ;;  %1747 = vmatprep.mubr.bf16.mxu0 %v1134_v34 }
 0x266   :  { %1666 = vmatmul.mubr.bf16.vlgmr.msra.gmra.mrb[12].mxu1 %v1133_v39  ;;  %1748 = vmatmul.mubr.bf16.vlgmr.msra.gmra.mrb[8].mxu0 %v1133_v39 }
 0x267   :  { %1675 = vmatpush1.bf16.msra.mxu1 %v2688_v35  ;;  %2414 = vmatpush3.bf16.msra.mxu0 %v2691_v37 }
 0x268   :  { %1676 = vmatprep.subr.bf16.mxu1 %v2694_v40  ;;  %2415 = vmatprep.subr.bf16.mxu0 %v2870_v33 }
 0x269   :  { %1706 = vmatprep.mubr.bf16.mxu1 %v2869_v0  ;;  %2429 = vmatprep.mubr.msk.bf16.mxu0 %vm2871_vm2, %v2870_v33  ;;  %v2704_v0 = vld [vmem:[#allocation7 + $0x1e0] ss:$12 sps:$4 sm:$0xff]  }
 0x26b   :  { %1677 = vmatpush1.bf16.msra.mxu1 %v2692_v41  ;;  %2416 = vmatpush3.bf16.msra.mxu0 %v2695_v42 }
 0x26c   :  { %1678 = vmatprep.subr.bf16.mxu1 %v2698_v43  ;;  %2417 = vmatprep.subr.bf16.mxu0 %v2870_v33 }
 0x26f   :  { %1679 = vmatpush1.bf16.msra.mxu1 %v2696_v44  ;;  %2418 = vmatpush3.bf16.msra.mxu0 %v2699_v45 }
 0x270   :  { %1680 = vmatprep.subr.bf16.mxu1 %v2702_v46  ;;  %2419 = vmatprep.subr.bf16.mxu0 %v2870_v33 }
 0x273   :  { %1681 = vmatpush1.bf16.msra.mxu1 %v2700_v47  ;;  %2420 = vmatpush3.bf16.msra.mxu0 %v2703_v48 }
 0x274   :  { %1682 = vmatprep.subr.bf16.mxu1 %v2706_v49  ;;  %2421 = vmatprep.subr.bf16.mxu0 %v2870_v33 }
 0x277   :  { %1683 = vmatpush1.bf16.msra.mxu1 %v2704_v0  ;;  %2422 = vmatpush3.bf16.msra.mxu0 %v2707_v50 }
 0x278   :  { %1684 = vmatprep.subr.bf16.mxu1 %v2710_v51  ;;  %2423 = vmatprep.subr.bf16.mxu0 %v2870_v33 }
 0x27b   :  { %1685 = vmatpush1.bf16.msra.mxu1 %v2708_v52  ;;  %2424 = vmatpush3.bf16.msra.mxu0 %v2711_v53  ;;  %v2275_v53 = vld [vmem:[%s3085_s8] ss:$0 sm:$0xff] }
 0x27c   :  { %1686 = vmatprep.subr.bf16.mxu1 %v2714_v54  ;;  %2425 = vmatprep.subr.bf16.mxu0 %v2870_v33 }
 0x27f   :  { %1687 = vmatpush1.bf16.msra.mxu1 %v2712_v55  ;;  %2426 = vmatpush3.bf16.msra.mxu0 %v2715_v56 }
 0x280   :  { %1688 = vmatprep.subr.bf16.mxu1 %v2718_v57  ;;  %2427 = vmatprep.subr.bf16.mxu0 %v2870_v33 }
 0x283   :  { %1689 = vmatpush1.bf16.msra.mxu1 %v2716_v58  ;;  %2428 = vmatpush3.bf16.msra.mxu0 %v2719_v59 }
 0x284   :  { %2433 = vmatprep.subr.bf16.mxu1 %v2870_v33  ;;  %2362 = vmatprep.subr.bf16.mxu0 %v2721_v63 }
 0x286   :  { %1707 = vmatmul.mubr.bf16.vlgmr.msra.gmra.mrb[12].mxu1 %v1135_v61  ;;  %2430 = vmatmul.mubr.bf16.vlgmr.msra.gmra.mrb[12].mxu0 %v1135_v61 }
 0x287   :  { %2449 = vmatprep.mubr.msk.bf16.mxu1 %vm2871_vm2, %v2870_v33  ;;  %2434 = vmatpush3.bf16.msra.mxu1 %v2720_v62 }
 0x288   :  { %2363 = vmatpush3.bf16.msra.mxu0 %v2722_v1  ;;  %2435 = vmatprep.subr.bf16.mxu1 %v2870_v33 }
 0x289   :  { %2364 = vmatprep.subr.bf16.mxu0 %v2724_v2 }
 0x28b   :  { %2436 = vmatpush3.bf16.msra.mxu1 %v2723_v3 }
 0x28c   :  { %2365 = vmatpush3.bf16.msra.mxu0 %v2725_v5  ;;  %2437 = vmatprep.subr.bf16.mxu1 %v2870_v33 }
 0x28d   :  { %2366 = vmatprep.subr.bf16.mxu0 %v2727_v6 }
 0x28f   :  { %2438 = vmatpush3.bf16.msra.mxu1 %v2726_v7 }
 0x290   :  { %2367 = vmatpush3.bf16.msra.mxu0 %v2728_v8  ;;  %2439 = vmatprep.subr.bf16.mxu1 %v2870_v33 }
 0x291   :  { %2368 = vmatprep.subr.bf16.mxu0 %v2730_v9 }
 0x293   :  { %2440 = vmatpush3.bf16.msra.mxu1 %v2729_v10 }
 0x294   :  { %2369 = vmatpush3.bf16.msra.mxu0 %v2731_v11  ;;  %2441 = vmatprep.subr.bf16.mxu1 %v2870_v33 }
 0x295   :  { %2370 = vmatprep.subr.bf16.mxu0 %v2733_v12 }
 0x297   :  { %2442 = vmatpush3.bf16.msra.mxu1 %v2732_v13 }
 0x298   :  { %2371 = vmatpush3.bf16.msra.mxu0 %v2734_v14  ;;  %2443 = vmatprep.subr.bf16.mxu1 %v2870_v33 }
 0x299   :  { %2372 = vmatprep.subr.bf16.mxu0 %v2736_v15 }
 0x29b   :  { %2444 = vmatpush3.bf16.msra.mxu1 %v2735_v16 }
 0x29c   :  { %2373 = vmatpush3.bf16.msra.mxu0 %v2737_v17  ;;  %2445 = vmatprep.subr.bf16.mxu1 %v2870_v33 }
 0x29d   :  { %2374 = vmatprep.subr.bf16.mxu0 %v2739_v19 }
 0x29f   :  { %2446 = vmatpush3.bf16.msra.mxu1 %v2738_v18 }
 0x2a0   :  { %2447 = vmatprep.subr.bf16.mxu1 %v2870_v33  ;;  %2375 = vmatpush3.bf16.msra.mxu0 %v2740_v20  ;;  %v1237_v33 = vrot.slane %v1232_v29, %v3008_v36 }
 0x2a1   :  { %2376 = vmatprep.subr.bf16.mxu0 %v2742_v22 }
 0x2a3   :  { %2448 = vmatpush3.bf16.msra.mxu1 %v2741_v21 }
 0x2a4   :  { %2377 = vmatpush3.bf16.msra.mxu0 %v2743_v23 }
 0x339   :  { %v2347_v24 = vpop.f32.mrb[8].mxu0 }
 0x33a   :  { %v2348_v25 = vpop.f32.mrb[9].mxu0 }
 0x33b   :  { %v2349_v26 = vadd.f32 %v2348_v25, %v2347_v24  ;;  %v2350_v27 = vpop.f32.mrb[10].mxu0 }
 0x33c   :  { %v2351_v28 = vpop.f32.mrb[11].mxu0 }
 0x33d   :  { %v1750_v32 = vadd.f32 %v2349_v26, %v1245_v30 }
 0x359   :  { %v1708_v34 = vpop.f32.mrb[12].mxu1  ;;  %v1789_v35 = vpop.f32.mrb[12].mxu0 }
 0x35a   :  { %v2455_v37 = vadd.f32 %v1708_v34, %v1237_v33  ;;  %v1790_v39 = vadd.f32 %v1789_v35, %v1750_v32  ;;  %v1710_v40 = vpop.f32.mrb[13].mxu1  ;;  %v2431_v41 = vpop.f32.mrb[13].mxu0 }
 0x35b   :  { %v2456_v42 = vadd.f32 %v1710_v40, %v1241_v31  ;;  %v1712_v43 = vpop.f32.mrb[14].mxu1  ;;  %v1792_v44 = vpop.f32.mrb[14].mxu0 }
 0x35c   :  { %v1795_v45 = vmax.f32 %v2455_v37, 0.0  ;;  %v1797_v46 = vmax.f32 %v1790_v39, 0.0  ;;  %v1713_v47 = vpop.f32.mrb[15].mxu1  ;;  %v2432_v48 = vpop.f32.mrb[15].mxu0 }
 0x35d   :  { %v1796_v49 = vmax.f32 %v2456_v42, 0.0 }
 0x35e   :  { %v1800_v4 = vpack.c.bf16 %v1797_v46, %v1797_v46  ;;  %v1798_v36 = vpack.c.bf16 %v1795_v45, %v1795_v45 }
 0x35f   :  { %v1799_v0 = vpack.c.bf16 %v1796_v49, %v1796_v49 }
 0x360   :  { %2450 = vmatmul.mubr.bf16.vlgmr.msra.gmra.mrb[16].mxu1 %v1800_v4 }
 0x361   :  { %2032 = vmatprep.mubr.bf16.mxu0 %v1799_v0 }
 0x362   :  { %2033 = vmatmul.mubr.bf16.vlgmr.msra.gmra.mrb[16].mxu0 %v1798_v36 }
 0x433   :  { %v2074_v38 = vpop.f32.mrb[16].mxu1 }
 0x434   :  { %v2451_v50 = vpop.f32.mrb[17].mxu1 }
 0x435   :  { %v2378_v51 = vpop.f32.mrb[16].mxu0  ;;  %v2077_v52 = vpop.f32.mrb[18].mxu1 }
 0x436   :  { %v2379_v54 = vpop.f32.mrb[17].mxu0  ;;  %v2452_v55 = vpop.f32.mrb[19].mxu1 }
 0x437   :  { %v2380_v56 = vadd.f32 %v2379_v54, %v2378_v51  ;;  %v2381_v57 = vpop.f32.mrb[18].mxu0 }
 0x438   :  { %v2382_v58 = vpop.f32.mrb[19].mxu0 }
 0x439   :  { %v2035_v59 = vadd.f32 %v2380_v56, %v2275_v53 }
 0x43b   :  { %v2075_v60 = vadd.f32 %v2074_v38, %v2035_v59 }
 0x43d   :  { %v2080_v61 = vpack.c.bf16 %v2075_v60, %v2075_v60 }
 0x43f   :  { %2081 = vst [vmem:[%s3086_s9] sm:$0xf] %v2080_v61 }
 0x440   :  { %2086 = vsyncpa [#allocation3], 1 }
 0x441   :  { %2087 = vsyncpa [#allocation5], 1 }
 0x442   :  { %2088 = vsyncpa [#allocation8], 1 }

</bundles_post_ra>
